<compile_context>
chip_gen: v6e
topology: v6e:2x2x1
jax: 0.10.0
libtpu: 0.0.40
codegen_flags: <defaults>
</compile_context>

<pallas_src>
import jax
import jax.numpy as jnp
from jax.experimental import pallas as pl
from jax.experimental.pallas import tpu as pltpu

D_IN = 1        # real input feature dim
H = 10          # real hidden dim
D_OUT = 1       # real output feature dim

LANE = 128      # lanes per vreg row
SUB = 8         # sublane granularity
TILE_ROWS = 1024  # (1024, 128) f32 = 512 KiB per buffer; ~2 MiB double-buffered I/O


def _mlp_kernel(w1_ref, b1_ref, w2_ref, b2_ref, x_ref, o_ref):
    # w1_ref, b1_ref, w2_ref : SMEM (10,)  f32   (fc1 weight col, fc1 bias, fc2 weight row)
    # b2_ref                 : SMEM (1,)   f32   (fc2 bias)
    # x_ref, o_ref           : VMEM (tile_rows, 128) f32 — batch elements laid out lane-dense
    x = x_ref[...]
    acc = jnp.zeros_like(x)
    # H = 10: fully unrolled elementwise loop (VPU muls/adds + EUP tanh).
    for j in range(H):
        acc = acc + w2_ref[j] * jnp.tanh(x * w1_ref[j] + b1_ref[j])
    o_ref[...] = jax.nn.sigmoid(acc + b2_ref[0])


@jax.jit
def net_forward(x, w1, b1, w2, b2):
    """Pallas forward pass.  x: (N, 1) f32 -> (N, 1) f32.

    w1, b1, w2: (10,) f32 ; b2: (1,) f32
    (w1 = fc1.weight[:, 0], w2 = fc2.weight[0, :] in PyTorch terms).
    """
    n = x.shape[0]

    # Lay the batch out lane-dense: rows of 128 elements, rows padded so that
    # the batch-tile evenly divides the slab.
    rows = -(-n // LANE)
    if rows <= TILE_ROWS:
        tile_rows = max(SUB, -(-rows // SUB) * SUB)
    else:
        tile_rows = TILE_ROWS
    rows_pad = -(-rows // tile_rows) * tile_rows
    total = rows_pad * LANE

    x_flat = jnp.ravel(x).astype(jnp.float32)
    x_slab = jnp.pad(x_flat, (0, total - n)).reshape(rows_pad, LANE)

    out_slab = pl.pallas_call(
        _mlp_kernel,
        out_shape=jax.ShapeDtypeStruct((rows_pad, LANE), jnp.float32),
        grid=(rows_pad // tile_rows,),
        in_specs=[
            # Tiny parameter vectors: whole-array, resident in SMEM.
            pl.BlockSpec(memory_space=pltpu.MemorySpace.SMEM),
            pl.BlockSpec(memory_space=pltpu.MemorySpace.SMEM),
            pl.BlockSpec(memory_space=pltpu.MemorySpace.SMEM),
            pl.BlockSpec(memory_space=pltpu.MemorySpace.SMEM),
            # Batch slab: tiled along rows, auto double-buffered.
            pl.BlockSpec((tile_rows, LANE), lambda i: (i, 0)),
        ],
        out_specs=pl.BlockSpec((tile_rows, LANE), lambda i: (i, 0)),
        compiler_params=pltpu.CompilerParams(
            dimension_semantics=("parallel",)),  # independent batch tiles (v7x 2-TC)
    )(w1, b1, w2, b2, x_slab)

    return out_slab.reshape(-1)[:n].reshape(n, D_OUT)


def init_params(key):
    """Deterministic init matching nn.Linear default (U(-1/sqrt(fan_in), ..))."""
    k1, k2, k3, k4 = jax.random.split(key, 4)
    bound1 = 1.0 / jnp.sqrt(jnp.float32(D_IN))
    bound2 = 1.0 / jnp.sqrt(jnp.float32(H))
    w1 = jax.random.uniform(k1, (H,), jnp.float32, -bound1, bound1)      # fc1.weight[:, 0]
    b1 = jax.random.uniform(k2, (H,), jnp.float32, -bound1, bound1)      # fc1.bias
    w2 = jax.random.uniform(k3, (H,), jnp.float32, -bound2, bound2)      # fc2.weight[0, :]
    b2 = jax.random.uniform(k4, (D_OUT,), jnp.float32, -bound2, bound2)  # fc2.bias
    return w1, b1, w2, b2


def reference_forward(x, w1, b1, w2, b2):
    h = jnp.tanh(x * w1[None, :] + b1[None, :])          # (N, 10)
    return jax.nn.sigmoid(h @ w2[:, None] + b2[None, :])  # (N, 1)


if __name__ == "__main__":
    key = jax.random.PRNGKey(0)
    kx, kp = jax.random.split(key)

    # Input consistent with the module: linspace(-1, 1, 100) + noisy copy -> (200, 1).
    n_half = 100
    x_pos = jnp.linspace(-1.0, 1.0, n_half, dtype=jnp.float32).reshape(n_half, 1)
    x_neg = x_pos + 0.1 * jax.random.normal(kx, (n_half, 1), jnp.float32)
    x = jnp.concatenate([x_pos, x_neg], axis=0)

    w1, b1, w2, b2 = init_params(kp)

    y = jax.block_until_ready(net_forward(x, w1, b1, w2, b2))
    y_ref = reference_forward(x, w1, b1, w2, b2)

    assert y.shape == (2 * n_half, 1)
    assert jnp.allclose(y, y_ref, atol=1e-5, rtol=1e-5), "mismatch vs reference"

    print("KERNEL_OK")
</pallas_src>

<mosaic_0001>
module attributes {stable_mosaic.version = 11 : i64} {
  func.func @_mlp_kernel(%arg0: i32, %arg1: memref<10xf32, #tpu.memory_space<smem>>, %arg2: memref<10xf32, #tpu.memory_space<smem>>, %arg3: memref<10xf32, #tpu.memory_space<smem>>, %arg4: memref<1xf32, #tpu.memory_space<smem>>, %arg5: memref<8x128xf32, #tpu.memory_space<vmem>>, %arg6: memref<8x128xf32, #tpu.memory_space<vmem>>) attributes {dimension_semantics = [#tpu.dimension_semantics<parallel>], iteration_bounds = array<i64: 1>, scalar_prefetch = 0 : i64, scratch_operands = 0 : i64, tpu.core_type = #tpu.core_type<tc>, window_params = [{transform_indices = @transform_0, window_bounds = array<i64: 10>}, {transform_indices = @transform_1, window_bounds = array<i64: 10>}, {transform_indices = @transform_2, window_bounds = array<i64: 10>}, {transform_indices = @transform_3, window_bounds = array<i64: 1>}, {transform_indices = @transform_4, window_bounds = array<i64: 8, 128>}, {transform_indices = @transform_5, window_bounds = array<i64: 8, 128>}]} {
    %c0 = arith.constant 0 : index
    %c0_0 = arith.constant 0 : index
    %0 = vector.load %arg5[%c0, %c0_0] : memref<8x128xf32, #tpu.memory_space<vmem>>, vector<8x128xf32>
    %cst = arith.constant 0.000000e+00 : f32
    %1 = vector.broadcast %cst : f32 to vector<8x128xf32>
    %c0_1 = arith.constant 0 : index
    %2 = memref.load %arg3[%c0_1] : memref<10xf32, #tpu.memory_space<smem>>
    %c0_2 = arith.constant 0 : index
    %3 = memref.load %arg1[%c0_2] : memref<10xf32, #tpu.memory_space<smem>>
    %4 = vector.broadcast %3 : f32 to vector<8x128xf32>
    %5 = arith.mulf %0, %4 : vector<8x128xf32>
    %c0_3 = arith.constant 0 : index
    %6 = memref.load %arg2[%c0_3] : memref<10xf32, #tpu.memory_space<smem>>
    %7 = vector.broadcast %6 : f32 to vector<8x128xf32>
    %8 = arith.addf %5, %7 : vector<8x128xf32>
    %9 = math.tanh %8 : vector<8x128xf32>
    %10 = vector.broadcast %2 : f32 to vector<8x128xf32>
    %11 = arith.mulf %10, %9 : vector<8x128xf32>
    %12 = arith.addf %1, %11 : vector<8x128xf32>
    %c1 = arith.constant 1 : index
    %13 = memref.load %arg3[%c1] : memref<10xf32, #tpu.memory_space<smem>>
    %c1_4 = arith.constant 1 : index
    %14 = memref.load %arg1[%c1_4] : memref<10xf32, #tpu.memory_space<smem>>
    %15 = vector.broadcast %14 : f32 to vector<8x128xf32>
    %16 = arith.mulf %0, %15 : vector<8x128xf32>
    %c1_5 = arith.constant 1 : index
    %17 = memref.load %arg2[%c1_5] : memref<10xf32, #tpu.memory_space<smem>>
    %18 = vector.broadcast %17 : f32 to vector<8x128xf32>
    %19 = arith.addf %16, %18 : vector<8x128xf32>
    %20 = math.tanh %19 : vector<8x128xf32>
    %21 = vector.broadcast %13 : f32 to vector<8x128xf32>
    %22 = arith.mulf %21, %20 : vector<8x128xf32>
    %23 = arith.addf %12, %22 : vector<8x128xf32>
    %c2 = arith.constant 2 : index
    %24 = memref.load %arg3[%c2] : memref<10xf32, #tpu.memory_space<smem>>
    %c2_6 = arith.constant 2 : index
    %25 = memref.load %arg1[%c2_6] : memref<10xf32, #tpu.memory_space<smem>>
    %26 = vector.broadcast %25 : f32 to vector<8x128xf32>
    %27 = arith.mulf %0, %26 : vector<8x128xf32>
    %c2_7 = arith.constant 2 : index
    %28 = memref.load %arg2[%c2_7] : memref<10xf32, #tpu.memory_space<smem>>
    %29 = vector.broadcast %28 : f32 to vector<8x128xf32>
    %30 = arith.addf %27, %29 : vector<8x128xf32>
    %31 = math.tanh %30 : vector<8x128xf32>
    %32 = vector.broadcast %24 : f32 to vector<8x128xf32>
    %33 = arith.mulf %32, %31 : vector<8x128xf32>
    %34 = arith.addf %23, %33 : vector<8x128xf32>
    %c3 = arith.constant 3 : index
    %35 = memref.load %arg3[%c3] : memref<10xf32, #tpu.memory_space<smem>>
    %c3_8 = arith.constant 3 : index
    %36 = memref.load %arg1[%c3_8] : memref<10xf32, #tpu.memory_space<smem>>
    %37 = vector.broadcast %36 : f32 to vector<8x128xf32>
    %38 = arith.mulf %0, %37 : vector<8x128xf32>
    %c3_9 = arith.constant 3 : index
    %39 = memref.load %arg2[%c3_9] : memref<10xf32, #tpu.memory_space<smem>>
    %40 = vector.broadcast %39 : f32 to vector<8x128xf32>
    %41 = arith.addf %38, %40 : vector<8x128xf32>
    %42 = math.tanh %41 : vector<8x128xf32>
    %43 = vector.broadcast %35 : f32 to vector<8x128xf32>
    %44 = arith.mulf %43, %42 : vector<8x128xf32>
    %45 = arith.addf %34, %44 : vector<8x128xf32>
    %c4 = arith.constant 4 : index
    %46 = memref.load %arg3[%c4] : memref<10xf32, #tpu.memory_space<smem>>
    %c4_10 = arith.constant 4 : index
    %47 = memref.load %arg1[%c4_10] : memref<10xf32, #tpu.memory_space<smem>>
    %48 = vector.broadcast %47 : f32 to vector<8x128xf32>
    %49 = arith.mulf %0, %48 : vector<8x128xf32>
    %c4_11 = arith.constant 4 : index
    %50 = memref.load %arg2[%c4_11] : memref<10xf32, #tpu.memory_space<smem>>
    %51 = vector.broadcast %50 : f32 to vector<8x128xf32>
    %52 = arith.addf %49, %51 : vector<8x128xf32>
    %53 = math.tanh %52 : vector<8x128xf32>
    %54 = vector.broadcast %46 : f32 to vector<8x128xf32>
    %55 = arith.mulf %54, %53 : vector<8x128xf32>
    %56 = arith.addf %45, %55 : vector<8x128xf32>
    %c5 = arith.constant 5 : index
    %57 = memref.load %arg3[%c5] : memref<10xf32, #tpu.memory_space<smem>>
    %c5_12 = arith.constant 5 : index
    %58 = memref.load %arg1[%c5_12] : memref<10xf32, #tpu.memory_space<smem>>
    %59 = vector.broadcast %58 : f32 to vector<8x128xf32>
    %60 = arith.mulf %0, %59 : vector<8x128xf32>
    %c5_13 = arith.constant 5 : index
    %61 = memref.load %arg2[%c5_13] : memref<10xf32, #tpu.memory_space<smem>>
    %62 = vector.broadcast %61 : f32 to vector<8x128xf32>
    %63 = arith.addf %60, %62 : vector<8x128xf32>
    %64 = math.tanh %63 : vector<8x128xf32>
    %65 = vector.broadcast %57 : f32 to vector<8x128xf32>
    %66 = arith.mulf %65, %64 : vector<8x128xf32>
    %67 = arith.addf %56, %66 : vector<8x128xf32>
    %c6 = arith.constant 6 : index
    %68 = memref.load %arg3[%c6] : memref<10xf32, #tpu.memory_space<smem>>
    %c6_14 = arith.constant 6 : index
    %69 = memref.load %arg1[%c6_14] : memref<10xf32, #tpu.memory_space<smem>>
    %70 = vector.broadcast %69 : f32 to vector<8x128xf32>
    %71 = arith.mulf %0, %70 : vector<8x128xf32>
    %c6_15 = arith.constant 6 : index
    %72 = memref.load %arg2[%c6_15] : memref<10xf32, #tpu.memory_space<smem>>
    %73 = vector.broadcast %72 : f32 to vector<8x128xf32>
    %74 = arith.addf %71, %73 : vector<8x128xf32>
    %75 = math.tanh %74 : vector<8x128xf32>
    %76 = vector.broadcast %68 : f32 to vector<8x128xf32>
    %77 = arith.mulf %76, %75 : vector<8x128xf32>
    %78 = arith.addf %67, %77 : vector<8x128xf32>
    %c7 = arith.constant 7 : index
    %79 = memref.load %arg3[%c7] : memref<10xf32, #tpu.memory_space<smem>>
    %c7_16 = arith.constant 7 : index
    %80 = memref.load %arg1[%c7_16] : memref<10xf32, #tpu.memory_space<smem>>
    %81 = vector.broadcast %80 : f32 to vector<8x128xf32>
    %82 = arith.mulf %0, %81 : vector<8x128xf32>
    %c7_17 = arith.constant 7 : index
    %83 = memref.load %arg2[%c7_17] : memref<10xf32, #tpu.memory_space<smem>>
    %84 = vector.broadcast %83 : f32 to vector<8x128xf32>
    %85 = arith.addf %82, %84 : vector<8x128xf32>
    %86 = math.tanh %85 : vector<8x128xf32>
    %87 = vector.broadcast %79 : f32 to vector<8x128xf32>
    %88 = arith.mulf %87, %86 : vector<8x128xf32>
    %89 = arith.addf %78, %88 : vector<8x128xf32>
    %c8 = arith.constant 8 : index
    %90 = memref.load %arg3[%c8] : memref<10xf32, #tpu.memory_space<smem>>
    %c8_18 = arith.constant 8 : index
    %91 = memref.load %arg1[%c8_18] : memref<10xf32, #tpu.memory_space<smem>>
    %92 = vector.broadcast %91 : f32 to vector<8x128xf32>
    %93 = arith.mulf %0, %92 : vector<8x128xf32>
    %c8_19 = arith.constant 8 : index
    %94 = memref.load %arg2[%c8_19] : memref<10xf32, #tpu.memory_space<smem>>
    %95 = vector.broadcast %94 : f32 to vector<8x128xf32>
    %96 = arith.addf %93, %95 : vector<8x128xf32>
    %97 = math.tanh %96 : vector<8x128xf32>
    %98 = vector.broadcast %90 : f32 to vector<8x128xf32>
    %99 = arith.mulf %98, %97 : vector<8x128xf32>
    %100 = arith.addf %89, %99 : vector<8x128xf32>
    %c9 = arith.constant 9 : index
    %101 = memref.load %arg3[%c9] : memref<10xf32, #tpu.memory_space<smem>>
    %c9_20 = arith.constant 9 : index
    %102 = memref.load %arg1[%c9_20] : memref<10xf32, #tpu.memory_space<smem>>
    %103 = vector.broadcast %102 : f32 to vector<8x128xf32>
    %104 = arith.mulf %0, %103 : vector<8x128xf32>
    %c9_21 = arith.constant 9 : index
    %105 = memref.load %arg2[%c9_21] : memref<10xf32, #tpu.memory_space<smem>>
    %106 = vector.broadcast %105 : f32 to vector<8x128xf32>
    %107 = arith.addf %104, %106 : vector<8x128xf32>
    %108 = math.tanh %107 : vector<8x128xf32>
    %109 = vector.broadcast %101 : f32 to vector<8x128xf32>
    %110 = arith.mulf %109, %108 : vector<8x128xf32>
    %111 = arith.addf %100, %110 : vector<8x128xf32>
    %c0_22 = arith.constant 0 : index
    %112 = memref.load %arg4[%c0_22] : memref<1xf32, #tpu.memory_space<smem>>
    %113 = vector.broadcast %112 : f32 to vector<8x128xf32>
    %114 = arith.addf %111, %113 : vector<8x128xf32>
    %115 = arith.negf %114 : vector<8x128xf32>
    %116 = math.exp %115 : vector<8x128xf32>
    %cst_23 = arith.constant 1.000000e+00 : f32
    %117 = vector.broadcast %cst_23 : f32 to vector<8x128xf32>
    %118 = arith.addf %117, %116 : vector<8x128xf32>
    %119 = arith.divf %117, %118 : vector<8x128xf32>
    %c0_24 = arith.constant 0 : index
    %c0_25 = arith.constant 0 : index
    %120 = vector.load %arg6[%c0_24, %c0_25] : memref<8x128xf32, #tpu.memory_space<vmem>>, vector<8x128xf32>
    tpu.vector_store %arg6[%c0_24, %c0_25], %119 {strides = array<i32>} : memref<8x128xf32, #tpu.memory_space<vmem>>, vector<8x128xf32>,
    return
  }
  func.func @transform_0(%arg0: i32) -> i32 {
    %c0_i32 = arith.constant 0 : i32
    %c0_i32_0 = arith.constant 0 : i32
    return %c0_i32 : i32
  }
  func.func @transform_1(%arg0: i32) -> i32 {
    %c0_i32 = arith.constant 0 : i32
    %c0_i32_0 = arith.constant 0 : i32
    return %c0_i32 : i32
  }
  func.func @transform_2(%arg0: i32) -> i32 {
    %c0_i32 = arith.constant 0 : i32
    %c0_i32_0 = arith.constant 0 : i32
    return %c0_i32 : i32
  }
  func.func @transform_3(%arg0: i32) -> i32 {
    %c0_i32 = arith.constant 0 : i32
    %c0_i32_0 = arith.constant 0 : i32
    return %c0_i32 : i32
  }
  func.func @transform_4(%arg0: i32) -> (i32, i32) {
    %c0_i32 = arith.constant 0 : i32
    %c0_i32_0 = arith.constant 0 : i32
    return %arg0, %c0_i32 : i32, i32
  }
  func.func @transform_5(%arg0: i32) -> (i32, i32) {
    %c0_i32 = arith.constant 0 : i32
    %c0_i32_0 = arith.constant 0 : i32
    return %arg0, %c0_i32 : i32, i32
  }
}

</mosaic_0001>

<bundles_post_ra>
// kernel: net_forward.1
= control target key start
LH: loop header
LB: loop body
LE: loop exit
PB: predicated region body
PF: predicated region fallthrough
CT: control target
= control target key end

     0   :  { %11 = vsyncpa [#allocation4], 0  ;;  %s360_s0 = inlined_call_operand.vmem [shape: f32[10], index: 0, kind: input, shape index: {}]   ;;  %s361_s1 = inlined_call_operand.vmem [shape: f32[10], index: 1, kind: input, shape index: {}]   ;;  %s362_s2 = inlined_call_operand.vmem [shape: f32[10], index: 2, kind: input, shape index: {}]   ;;  %s363_s3 = inlined_call_operand.<no memory space> [shape: f32[1], index: 3, kind: input, shape index: {}]   ;;  %s364_s4 = inlined_call_operand.vmem [shape: f32[8,128], index: 4, kind: input, shape index: {}]   ;;  %s365_s5 = inlined_call_operand.vmem [shape: f32[8,128], index: 5, kind: output, shape index: {}]  }
   0x1   :  { %12 = vsyncpa [#allocation6], 0  ;;  %s29_s20 = sshll.u32 %s361_s1, 4  ;;  %s19_s23 = sshll.u32 %s360_s0, 4  ;;  %s30_s20 = int_to_ptr.vmem [resolvable:$true] %s29_s20  ;;  %s20_s23 = int_to_ptr.vmem [resolvable:$true] %s19_s23 }
   0x2   :  { %s239_s24 = scalar_lea.vmem %s30_s20, 16  ;;  %p244_p1 = scmp.lt.s32.totalorder %s30_s20, %s30_s20 }
   0x3   :  { %p240_p0 = scmp.ne.s32.totalorder %s30_s20, %s239_s24  ;;  %p245_p2 = scmp.lt.s32.totalorder %s239_s24, %s239_s24 }
   0x5   :  { %p246_p3 = por %p245_p2, %p244_p1 }
   0x7   :  { %p247_p4 = pnand %p246_p3, %p240_p0 }
   0x9   :  { %250 = shalt.err (!%p247_p4)
}
   0xa   :  { %s279_s25 = smov [#allocation5]   ;;  %s251_s26 = scalar_lea.vmem %s20_s23, 16 }
   0xb   :  { %32 = dma.vmem_to_smem %s30_s20, 16, %s279_s25, [#allocation6]  }
   0xc   :  { %p252_p5 = scmp.ne.s32.totalorder %s20_s23, %s251_s26  ;;  %p256_p6 = scmp.lt.s32.totalorder %s20_s23, %s20_s23 }
   0xd   :  { %p257_p7 = scmp.lt.s32.totalorder %s251_s26, %s251_s26 }
   0xf   :  { %p258_p8 = por %p257_p7, %p256_p6 }
  0x11   :  { %p259_p9 = pnand %p258_p8, %p252_p5 }
  0x13   :  { %262 = shalt.err (!%p259_p9)
}
  0x14   :  { %s280_s1 = smov [#allocation3]   ;;  %s39_s28 = sshll.u32 %s362_s2, 4  ;;  %s40_s28 = int_to_ptr.vmem [resolvable:$true] %s39_s28 }
  0x15   :  { %22 = dma.vmem_to_smem %s20_s23, 16, %s280_s1, [#allocation4]  }
  0x16   :  { %s263_s29 = scalar_lea.vmem %s40_s28, 16  ;;  %p268_p11 = scmp.lt.s32.totalorder %s40_s28, %s40_s28 }
  0x17   :  { %p264_p10 = scmp.ne.s32.totalorder %s40_s28, %s263_s29  ;;  %p269_p12 = scmp.lt.s32.totalorder %s263_s29, %s263_s29 }
  0x19   :  { %p270_p13 = por %p269_p12, %p268_p11 }
  0x1b   :  { %p271_p0 = pnand %p270_p13, %p264_p10 }
  0x1d   :  { %274 = shalt.err (!%p271_p0)
}
  0x1e   :  { %s281_s30 = smov [#allocation7]  }
  0x1f   :  { %42 = dma.vmem_to_smem %s40_s28, 16, %s281_s30, [#allocation6]  }
  0x20   :  { %275 = dma.done.wait [#allocation4], 16  }
  0x21   :  { %276 = vsyncadd [#allocation4], 4294967280 }
  0x22   :  { %277 = dma.done.wait [#allocation6], 32  }
  0x23   :  { %278 = vsyncadd [#allocation6], 4294967264 }
  0x24   :  { %56 = sfence }
  0x25   :  { %s59_s6 = sld [smem:[#allocation3]]  ;;  %v324_v0 = vld [vmem:[%s364_s4] sm:$0xff] }
  0x26   :  { %s62_s7 = sld [smem:[#allocation5]] }
  0x27   :  { %s185_s8 = sld [smem:[#allocation3 + $0x1]] }
  0x28   :  { %s186_s10 = sld [smem:[#allocation5 + $0x1]] }
  0x29   :  { %s188_s11 = sld [smem:[#allocation3 + $0x2]] }
  0x2a   :  { %s189_s12 = sld [smem:[#allocation5 + $0x2]] }
  0x2b   :  { %v60_v1 = vstv %s59_s6  ;;  %s191_s13 = sld [smem:[#allocation3 + $0x3]] }
  0x2c   :  { %v61_v2 = vmul.f32 %v60_v1, %v324_v0  ;;  %v63_v3 = vstv %s62_s7  ;;  %s192_s14 = sld [smem:[#allocation5 + $0x3]] }
  0x2d   :  { %v71_v5 = vstv %s185_s8  ;;  %s194_s15 = sld [smem:[#allocation3 + $0x4]] }
  0x2e   :  { %v64_v4 = vadd.f32 %v63_v3, %v61_v2  ;;  %v72_v6 = vmul.f32 %v71_v5, %v324_v0  ;;  %v74_v7 = vstv %s186_s10  ;;  %s195_s4 = sld [smem:[#allocation5 + $0x4]] }
  0x2f   :  { %v82_v9 = vstv %s188_s11  ;;  %s329_s16 = sld [smem:[#allocation7]] }
  0x30   :  { %215 = vtanh.f32 %v64_v4  ;;  %v75_v8 = vadd.f32 %v74_v7, %v72_v6  ;;  %v83_v10 = vmul.f32 %v82_v9, %v324_v0  ;;  %v85_v11 = vstv %s189_s12  ;;  %s197_s17 = sld [smem:[#allocation3 + $0x5]] }
  0x31   :  { %v93_v13 = vstv %s191_s13  ;;  %s198_s18 = sld [smem:[#allocation5 + $0x5]] }
  0x32   :  { %217 = vtanh.f32 %v75_v8  ;;  %v86_v12 = vadd.f32 %v85_v11, %v83_v10  ;;  %v94_v14 = vmul.f32 %v93_v13, %v324_v0  ;;  %v96_v15 = vstv %s192_s14  ;;  %s332_s19 = sld [smem:[#allocation7 + $0x1]] }
  0x33   :  { %v104_v17 = vstv %s194_s15  ;;  %s200_s20 = sld [smem:[#allocation3 + $0x6]] }
  0x34   :  { %219 = vtanh.f32 %v86_v12  ;;  %v97_v16 = vadd.f32 %v96_v15, %v94_v14  ;;  %v105_v18 = vmul.f32 %v104_v17, %v324_v0  ;;  %v107_v19 = vstv %s195_s4  ;;  %s201_s21 = sld [smem:[#allocation5 + $0x6]] }
  0x35   :  { %s335_s22 = sld [smem:[#allocation7 + $0x2]]  ;;  %v66_v24 = vstv %s329_s16  ;;  %v169_v15 = vstv %s363_s3 }
  0x36   :  { %221 = vtanh.f32 %v97_v16  ;;  %v108_v20 = vadd.f32 %v107_v19, %v105_v18  ;;  %v115_v21 = vstv %s197_s17  ;;  %s203_s23 = sld [smem:[#allocation3 + $0x7]] }
  0x37   :  { %v116_v22 = vmul.f32 %v115_v21, %v324_v0  ;;  %v118_v23 = vstv %s198_s18  ;;  %s204_s24 = sld [smem:[#allocation5 + $0x7]] }
  0x38   :  { %s339_s25 = sld [smem:[#allocation7 + $0x3]]  ;;  %223 = vtanh.f32 %v108_v20  ;;  %v77_v28 = vstv %s332_s19 }
  0x39   :  { %v119_v26 = vadd.f32 %v118_v23, %v116_v22  ;;  %v126_v27 = vstv %s200_s20  ;;  %s206_s26 = sld [smem:[#allocation3 + $0x8]] }
  0x3a   :  { %v127_v29 = vmul.f32 %v126_v27, %v324_v0  ;;  %v129_v30 = vstv %s201_s21  ;;  %s207_s1 = sld [smem:[#allocation5 + $0x8]] }
  0x3b   :  { %s343_s0 = sld [smem:[#allocation7 + $0x4]]  ;;  %225 = vtanh.f32 %v119_v26  ;;  %v88_v36 = vstv %s335_s22 }
  0x3c   :  { %v130_v33 = vadd.f32 %v129_v30, %v127_v29  ;;  %v137_v34 = vstv %s203_s23  ;;  %s209_s27 = sld [smem:[#allocation3 + $0x9]] }
  0x3d   :  { %v216_v25 = vpop.eup %215  ;;  %v138_v37 = vmul.f32 %v137_v34, %v324_v0  ;;  %v140_v38 = vstv %s204_s24  ;;  %s210_s28 = sld [smem:[#allocation5 + $0x9]] }
  0x3e   :  { %v67_v31 = vmul.f32 %v216_v25, %v66_v24  ;;  %s347_s29 = sld [smem:[#allocation7 + $0x5]]  ;;  %227 = vtanh.f32 %v130_v33  ;;  %v99_v44 = vstv %s339_s25 }
  0x3f   :  { %v218_v32 = vpop.eup %217  ;;  %v141_v41 = vadd.f32 %v140_v38, %v138_v37  ;;  %v148_v42 = vstv %s206_s26  ;;  %s199_s30 = sld [smem:[#allocation7 + $0x6]] }
  0x40   :  { %v78_v35 = vmul.f32 %v218_v32, %v77_v28  ;;  %v149_v45 = vmul.f32 %v148_v42, %v324_v0  ;;  %v151_v46 = vstv %s207_s1  ;;  %s202_s6 = sld [smem:[#allocation7 + $0x7]] }
  0x41   :  { %v220_v39 = vpop.eup %219  ;;  %229 = vtanh.f32 %v141_v41  ;;  %v110_v52 = vstv %s343_s0  ;;  %s205_s7 = sld [smem:[#allocation7 + $0x8]] }
  0x42   :  { %v79_v40 = vadd.f32 %v78_v35, %v67_v31  ;;  %v89_v43 = vmul.f32 %v220_v39, %v88_v36  ;;  %v152_v49 = vadd.f32 %v151_v46, %v149_v45  ;;  %v159_v50 = vstv %s209_s27  ;;  %s208_s8 = sld [smem:[#allocation7 + $0x9]] }
  0x43   :  { %v222_v47 = vpop.eup %221  ;;  %v160_v53 = vmul.f32 %v159_v50, %v324_v0  ;;  %v162_v54 = vstv %s210_s28 }
  0x44   :  { %v90_v48 = vadd.f32 %v89_v43, %v79_v40  ;;  %v100_v51 = vmul.f32 %v222_v47, %v99_v44  ;;  %231 = vtanh.f32 %v152_v49  ;;  %v121_v59 = vstv %s347_s29 }
  0x45   :  { %v224_v55 = vpop.eup %223  ;;  %v163_v57 = vadd.f32 %v162_v54, %v160_v53  ;;  %v132_v63 = vstv %s199_s30 }
  0x46   :  { %v101_v56 = vadd.f32 %v100_v51, %v90_v48  ;;  %v111_v58 = vmul.f32 %v224_v55, %v110_v52  ;;  %v143_v4 = vstv %s202_s6 }
  0x47   :  { %233 = vtanh.f32 %v163_v57  ;;  %v154_v7 = vstv %s205_s7 }
  0x48   :  { %v226_v60 = vpop.eup %225  ;;  %v112_v61 = vadd.f32 %v111_v58, %v101_v56  ;;  %v165_v11 = vstv %s208_s8 }
  0x49   :  { %v122_v62 = vmul.f32 %v226_v60, %v121_v59 }
  0x4b   :  { %v228_v1 = vpop.eup %227  ;;  %v123_v2 = vadd.f32 %v122_v62, %v112_v61 }
  0x4c   :  { %v133_v3 = vmul.f32 %v228_v1, %v132_v63 }
  0x4e   :  { %v230_v0 = vpop.eup %229  ;;  %v134_v5 = vadd.f32 %v133_v3, %v123_v2 }
  0x4f   :  { %v144_v6 = vmul.f32 %v230_v0, %v143_v4 }
  0x51   :  { %v232_v8 = vpop.eup %231  ;;  %v145_v9 = vadd.f32 %v144_v6, %v134_v5 }
  0x52   :  { %v155_v10 = vmul.f32 %v232_v8, %v154_v7 }
  0x54   :  { %v234_v12 = vpop.eup %233  ;;  %v156_v13 = vadd.f32 %v155_v10, %v145_v9 }
  0x55   :  { %v166_v14 = vmul.f32 %v234_v12, %v165_v11 }
  0x57   :  { %v167_v16 = vadd.f32 %v166_v14, %v156_v13 }
  0x59   :  { %v170_v17 = vadd.f32 %v169_v15, %v167_v16 }
  0x5b   :  { %v211_v18 = vmul.f32 -1.442695, %v170_v17 }
  0x5d   :  { %235 = vpow2.f32 %v211_v18 }
  0x6a   :  { %v236_v19 = vpop.eup %235 }
  0x6b   :  { %v174_v20 = vadd.f32 1.0, %v236_v19 }
  0x6d   :  { %237 = vrcp.f32 %v174_v20 }
  0x7a   :  { %v238_v21 = vpop.eup %237 }
  0x7b   :  { %177 = vst [vmem:[%s365_s5] sm:$0xff] %v238_v21 }
  0x7c   :  { %182 = vsyncpa [#allocation4], 1 }
  0x7d   :  { %183 = vsyncpa [#allocation6], 1 }

</bundles_post_ra>
